<compile_context>
chip_gen: v7x
topology: tpu7x:2x2x1
jax: 0.10.0
libtpu: 0.0.40
codegen_flags: <defaults>
</compile_context>

<pallas_src>
import jax
import jax.numpy as jnp
from jax.experimental import pallas as pl
from jax.experimental.pallas import tpu as pltpu


def _round_up(x, m):
    return (x + m - 1) // m * m


def _vmem_budget_bytes():
    """~75% of physical VMEM, capped at 96 MiB (v7x: 64 MiB -> 48 MiB budget)."""
    cap = 64 * 1024 * 1024                      # conservative fallback (v7x/TC)
    try:
        cap = int(pltpu.get_tpu_info().vmem_capacity_bytes)
    except Exception:
        pass
    return int(min(cap * 3 // 4, 96 * 1024 * 1024))


def _nll_rows_kernel(x_ref, tgt_ref, msk_ref, out_ref, acc_ref):
    """Per-row masked negative gathered log-prob, streamed over vocab tiles.

    acc_ref is a (tile_r, acc_lanes) f32 lane-wise partial-sum accumulator that
    stays resident across the vocab grid axis; the cross-lane (XLU) reduce and
    the mask are applied once, in the last-vocab-step finalize.
    """
    v = pl.program_id(1)

    @pl.when(v == 0)
    def _init():
        acc_ref[...] = jnp.zeros_like(acc_ref)

    x = x_ref[...]                                    # native dtype (tile_r, tile_v)
    tile_v = x.shape[1]
    # Loop-invariant local iota + per-row shifted target (no full-tile add of
    # v*tile_v every step).
    col = jax.lax.broadcasted_iota(jnp.int32, x.shape, 1)
    local_tgt = tgt_ref[...] - v * tile_v             # (tile_r, 1) int32
    # Select in the native dtype.  Garbage columns of a partial edge block can
    # never match: their global index is >= V > any valid target.
    sel = jnp.where(col == local_tgt, x, jnp.zeros((), x.dtype))

    acc_lanes = acc_ref.shape[1]
    if tile_v == acc_lanes:
        # Single-chunk tile: plain VPU add into the f32 accumulator.
        acc_ref[...] += sel.astype(jnp.float32)
    else:
        # tile_v is a multiple of 128 (> 128): collapse to 128 lanes with a
        # VPU add tree in the native dtype (exact: <= 1 nonzero per row across
        # the whole vocab), then upcast only the (tile_r, 128) partial.
        parts = [sel[:, j * 128:(j + 1) * 128] for j in range(tile_v // 128)]
        while len(parts) > 1:
            nxt = [parts[i] + parts[i + 1] for i in range(0, len(parts) - 1, 2)]
            if len(parts) % 2:
                nxt.append(parts[-1])
            parts = nxt
        acc_ref[...] += parts[0].astype(jnp.float32)

    @pl.when(v == pl.num_programs(1) - 1)
    def _finalize():
        m = msk_ref[...]                                        # (tile_r, 1)
        row = jnp.sum(acc_ref[...], axis=1, keepdims=True)      # one XLU reduce
        # Mask-gate the write: rows of a partial edge block beyond R may carry
        # garbage (possibly NaN) but always have mask == 0.
        out_ref[...] = jnp.where(m > 0.0, -row * m, jnp.zeros_like(row))


def language_model_criterion(inp, target, mask, cls_prob, cls_label, *,
                             tile_rows=512, tile_vocab=4096, x_buffers=2):
    """JAX/Pallas equivalent of LanguageModelCriterion.forward.

    inp: (B, T, V) log-probabilities (f32 or bf16 -- streamed in native dtype).
    Returns (loss, nll_loss, cls_loss).
    """
    B, T, V = inp.shape
    # Glue (truncation / reshape) stays in plain JAX.
    target = target[:, :T].astype(jnp.int32)
    mask = mask[:, :T].astype(jnp.float32)

    R = B * T
    x = inp.reshape(R, V)                  # native dtype; no f32 copy in HBM
    tgt = target.reshape(R, 1)
    msk = mask.reshape(R, 1)

    # ---- Row tiling: large tiles, but >= 2 row tiles so both v7x TCs get work.
    tile_r = max(8, min(tile_rows, _round_up(R, 8)))
    if R > 8:
        tile_r = min(tile_r, _round_up((R + 1) // 2, 8))

    # ---- Vocab tiling: a multiple of 128, or the whole vocab.  x is never
    #      padded; a ragged last vocab tile is handled as a partial edge block.
    tile_v = tile_vocab if V > tile_vocab else V

    # ---- Clamp the multi-buffered x tiles to the per-generation VMEM budget.
    budget = _vmem_budget_bytes()
    n_buf = max(2, int(x_buffers))
    itemsize = x.dtype.itemsize
    while (n_buf * tile_r * tile_v * itemsize > budget // 2
           and tile_v % 256 == 0 and tile_v > 512):
        tile_v //= 2

    n_row_tiles = pl.cdiv(R, tile_r)
    n_voc_tiles = pl.cdiv(V, tile_v)
    r_pad = n_row_tiles * tile_r
    if r_pad != R:
        # Only the tiny per-row arrays are padded (zeros => masked out); the
        # big (R, V) tensor is left untouched.
        tgt = jnp.pad(tgt, ((0, r_pad - R), (0, 0)))
        msk = jnp.pad(msk, ((0, r_pad - R), (0, 0)))

    acc_lanes = 128 if tile_v % 128 == 0 else tile_v

    x_spec_kwargs = {}
    if n_buf != 2:   # optional deeper pipelining (only if xprof shows exposed DMA)
        x_spec_kwargs["pipeline_mode"] = pl.Buffered(n_buf)
    x_spec = pl.BlockSpec((tile_r, tile_v), lambda r, v: (r, v), **x_spec_kwargs)

    nll_rows = pl.pallas_call(
        _nll_rows_kernel,
        out_shape=jax.ShapeDtypeStruct((r_pad, 1), jnp.float32),
        grid_spec=pltpu.PrefetchScalarGridSpec(
            num_scalar_prefetch=0,
            grid=(n_row_tiles, n_voc_tiles),        # vocab (reduction) axis last
            in_specs=[
                x_spec,
                pl.BlockSpec((tile_r, 1), lambda r, v: (r, 0)),
                pl.BlockSpec((tile_r, 1), lambda r, v: (r, 0)),
            ],
            out_specs=pl.BlockSpec((tile_r, 1), lambda r, v: (r, 0)),
            scratch_shapes=[pltpu.VMEM((tile_r, acc_lanes), jnp.float32)],
        ),
        compiler_params=pltpu.CompilerParams(
            dimension_semantics=("parallel", "arbitrary"),
            vmem_limit_bytes=budget,
        ),
    )(x, tgt, msk)

    # Single final divide (not per-tile) -- matches torch semantics, including
    # NaN on an all-zero mask.
    nll_loss = jnp.sum(nll_rows) / jnp.sum(mask)

    # Tiny (N, 4) classification cross entropy: plain jnp/XLA (per perf review,
    # a dedicated Pallas launch for a lane-masked 4-wide op costs more than it
    # saves).
    cp = cls_prob.reshape(-1, 4).astype(jnp.float32)
    cl = cls_label.reshape(-1).astype(jnp.int32)
    logp = jax.nn.log_softmax(cp, axis=-1)
    cls_loss = -jnp.mean(jnp.take_along_axis(logp, cl[:, None], axis=1)[:, 0])

    loss = nll_loss + 0.2 * cls_loss
    return loss, nll_loss, cls_loss


def _reference(inp, target, mask, cls_prob, cls_label):
    """Pure-JAX reference for sanity checking."""
    B, T, V = inp.shape
    target = target[:, :T].astype(jnp.int32)
    mask = mask[:, :T].astype(jnp.float32)
    logp = inp.astype(jnp.float32)
    gathered = jnp.take_along_axis(logp, target[:, :, None], axis=2)[..., 0]
    nll = jnp.sum(-gathered * mask) / jnp.sum(mask)
    cp = cls_prob.reshape(-1, 4).astype(jnp.float32)
    cl = cls_label.reshape(-1).astype(jnp.int32)
    lp = jax.nn.log_softmax(cp, axis=-1)
    cls = jnp.mean(-jnp.take_along_axis(lp, cl[:, None], axis=1)[:, 0])
    return nll + 0.2 * cls, nll, cls


if __name__ == "__main__":
    key = jax.random.PRNGKey(0)
    k1, k2, k3, k4, k5, k6 = jax.random.split(key, 6)

    # ---- Test 1: small f32 path (single vocab tile), tight tolerance. ------
    B, T, Tfull, V, N = 2, 8, 10, 32, 6
    inp = jax.nn.log_softmax(jax.random.normal(k1, (B, T, V), jnp.float32), -1)
    target = jax.random.randint(k2, (B, Tfull), 0, V).astype(jnp.int32)
    mask = jnp.broadcast_to(
        (jnp.arange(Tfull)[None, :] < 6).astype(jnp.float32), (B, Tfull))
    cls_prob = jax.random.normal(k3, (N, 4), jnp.float32)
    cls_label = jax.random.randint(k4, (N,), 0, 4).astype(jnp.int32)

    loss, nll, cls = language_model_criterion(inp, target, mask, cls_prob, cls_label)
    jax.block_until_ready((loss, nll, cls))
    r_loss, r_nll, r_cls = _reference(inp, target, mask, cls_prob, cls_label)
    assert jnp.allclose(loss, r_loss, atol=1e-5), (loss, r_loss)
    assert jnp.allclose(nll, r_nll, atol=1e-5), (nll, r_nll)
    assert jnp.allclose(cls, r_cls, atol=1e-5), (cls, r_cls)

    # ---- Test 2: bf16 log-probs, multi-vocab-tile streaming, the 128-lane ---
    # add tree, and ragged edges (row padding + partial last vocab block).
    B2, T2, Tfull2, V2 = 2, 12, 16, 640
    inp2 = jax.nn.log_softmax(
        jax.random.normal(k5, (B2, T2, V2), jnp.float32), -1).astype(jnp.bfloat16)
    target2 = jax.random.randint(k6, (B2, Tfull2), 0, V2).astype(jnp.int32)
    mask2 = jnp.broadcast_to(
        (jnp.arange(Tfull2)[None, :] < 9).astype(jnp.float32), (B2, Tfull2))

    loss2, nll2, cls2 = language_model_criterion(
        inp2, target2, mask2, cls_prob, cls_label, tile_rows=16, tile_vocab=256)
    jax.block_until_ready((loss2, nll2, cls2))
    r_loss2, r_nll2, r_cls2 = _reference(inp2, target2, mask2, cls_prob, cls_label)
    # bf16 values are gathered exactly and summed in f32 -> tight tolerance.
    assert jnp.allclose(nll2, r_nll2, rtol=1e-4, atol=1e-4), (nll2, r_nll2)
    assert jnp.allclose(loss2, r_loss2, rtol=1e-4, atol=1e-4), (loss2, r_loss2)

    print("KERNEL_OK")
</pallas_src>

<mosaic_0001>
module attributes {stable_mosaic.version = 11 : i64} {
  func.func @_nll_rows_kernel(%arg0: i32, %arg1: i32, %arg2: memref<8x32xf32, #tpu.memory_space<vmem>>, %arg3: memref<8x1xi32, #tpu.memory_space<vmem>>, %arg4: memref<8x1xf32, #tpu.memory_space<vmem>>, %arg5: memref<8x1xf32, #tpu.memory_space<vmem>>, %arg6: memref<8x32xf32, #tpu.memory_space<vmem>>) attributes {dimension_semantics = [#tpu.dimension_semantics<parallel>, #tpu.dimension_semantics<arbitrary>], iteration_bounds = array<i64: 2, 1>, scalar_prefetch = 0 : i64, scratch_operands = 1 : i64, tpu.core_type = #tpu.core_type<tc>, window_params = [{transform_indices = @transform_0, window_bounds = array<i64: 8, 32>}, {transform_indices = @transform_1, window_bounds = array<i64: 8, 1>}, {transform_indices = @transform_2, window_bounds = array<i64: 8, 1>}, {transform_indices = @transform_3, window_bounds = array<i64: 8, 1>}]} {
    %c0_i32 = arith.constant 0 : i32
    %0 = arith.cmpi eq, %arg1, %c0_i32 : i32
    %1 = arith.extui %0 : i1 to i32
    %c0_i32_0 = arith.constant 0 : i32
    %2 = arith.cmpi ne, %1, %c0_i32_0 : i32
    scf.if %2 {
      %cst_10 = arith.constant 0.000000e+00 : f32
      %19 = vector.broadcast %cst_10 : f32 to vector<8x32xf32>
      %c0_11 = arith.constant 0 : index
      %c0_12 = arith.constant 0 : index
      %20 = vector.load %arg6[%c0_11, %c0_12] : memref<8x32xf32, #tpu.memory_space<vmem>>, vector<8x32xf32>
      tpu.vector_store %arg6[%c0_11, %c0_12], %19 {strides = array<i32>} : memref<8x32xf32, #tpu.memory_space<vmem>>, vector<8x32xf32>,
    } else {
    }
    %c0 = arith.constant 0 : index
    %c0_1 = arith.constant 0 : index
    %3 = vector.load %arg2[%c0, %c0_1] : memref<8x32xf32, #tpu.memory_space<vmem>>, vector<8x32xf32>
    %4 = tpu.iota {dimensions = array<i32: 1>} : vector<8x32xi32>
    %c0_2 = arith.constant 0 : index
    %c0_3 = arith.constant 0 : index
    %5 = vector.load %arg3[%c0_2, %c0_3] : memref<8x1xi32, #tpu.memory_space<vmem>>, vector<8x1xi32>
    %c32_i32 = arith.constant 32 : i32
    %6 = arith.muli %arg1, %c32_i32 : i32
    %7 = vector.broadcast %6 : i32 to vector<8x1xi32>
    %8 = arith.subi %5, %7 : vector<8x1xi32>
    %9 = vector.broadcast %8 : vector<8x1xi32> to vector<8x32xi32>
    %10 = arith.cmpi eq, %4, %9 : vector<8x32xi32>
    %cst = arith.constant 0.000000e+00 : f32
    %11 = vector.broadcast %cst : f32 to vector<8x32xf32>
    %12 = arith.select %10, %3, %11 : vector<8x32xi1>, vector<8x32xf32>
    %c0_4 = arith.constant 0 : index
    %c0_5 = arith.constant 0 : index
    %13 = vector.load %arg6[%c0_4, %c0_5] : memref<8x32xf32, #tpu.memory_space<vmem>>, vector<8x32xf32>
    %14 = arith.addf %13, %12 : vector<8x32xf32>
    %c0_6 = arith.constant 0 : index
    %c0_7 = arith.constant 0 : index
    %15 = vector.load %arg6[%c0_6, %c0_7] : memref<8x32xf32, #tpu.memory_space<vmem>>, vector<8x32xf32>
    tpu.vector_store %arg6[%c0_6, %c0_7], %14 {strides = array<i32>} : memref<8x32xf32, #tpu.memory_space<vmem>>, vector<8x32xf32>,
    %c0_i32_8 = arith.constant 0 : i32
    %16 = arith.cmpi eq, %arg1, %c0_i32_8 : i32
    %17 = arith.extui %16 : i1 to i32
    %c0_i32_9 = arith.constant 0 : i32
    %18 = arith.cmpi ne, %17, %c0_i32_9 : i32
    scf.if %18 {
      %c0_10 = arith.constant 0 : index
      %c0_11 = arith.constant 0 : index
      %19 = vector.load %arg4[%c0_10, %c0_11] : memref<8x1xf32, #tpu.memory_space<vmem>>, vector<8x1xf32>
      %c0_12 = arith.constant 0 : index
      %c0_13 = arith.constant 0 : index
      %20 = vector.load %arg6[%c0_12, %c0_13] : memref<8x32xf32, #tpu.memory_space<vmem>>, vector<8x32xf32>
      %cst_14 = arith.constant dense<0.000000e+00> : vector<8xf32>
      %21 = vector.multi_reduction <add>, %20, %cst_14 [1] : vector<8x32xf32> to vector<8xf32>
      %22 = vector.shape_cast %21 : vector<8xf32> to vector<8x1xf32>
      %cst_15 = arith.constant 0.000000e+00 : f32
      %23 = vector.broadcast %cst_15 : f32 to vector<8x1xf32>
      %24 = arith.cmpf ogt, %19, %23 : vector<8x1xf32>
      %cst_16 = arith.constant 0.000000e+00 : f32
      %25 = vector.broadcast %cst_16 : f32 to vector<8x1xf32>
      %26 = arith.subf %25, %22 : vector<8x1xf32>
      %27 = arith.mulf %26, %19 : vector<8x1xf32>
      %cst_17 = arith.constant 0.000000e+00 : f32
      %28 = vector.broadcast %cst_17 : f32 to vector<8x1xf32>
      %29 = arith.select %24, %27, %28 : vector<8x1xi1>, vector<8x1xf32>
      %c0_18 = arith.constant 0 : index
      %c0_19 = arith.constant 0 : index
      %30 = vector.load %arg5[%c0_18, %c0_19] : memref<8x1xf32, #tpu.memory_space<vmem>>, vector<8x1xf32>
      tpu.vector_store %arg5[%c0_18, %c0_19], %29 {strides = array<i32>} : memref<8x1xf32, #tpu.memory_space<vmem>>, vector<8x1xf32>,
    } else {
    }
    return
  }
  func.func @transform_0(%arg0: i32, %arg1: i32) -> (i32, i32) {
    %c0_i32 = arith.constant 0 : i32
    return %arg0, %arg1 : i32, i32
  }
  func.func @transform_1(%arg0: i32, %arg1: i32) -> (i32, i32) {
    %c0_i32 = arith.constant 0 : i32
    %c0_i32_0 = arith.constant 0 : i32
    return %arg0, %c0_i32 : i32, i32
  }
  func.func @transform_2(%arg0: i32, %arg1: i32) -> (i32, i32) {
    %c0_i32 = arith.constant 0 : i32
    %c0_i32_0 = arith.constant 0 : i32
    return %arg0, %c0_i32 : i32, i32
  }
  func.func @transform_3(%arg0: i32, %arg1: i32) -> (i32, i32) {
    %c0_i32 = arith.constant 0 : i32
    %c0_i32_0 = arith.constant 0 : i32
    return %arg0, %c0_i32 : i32, i32
  }
}

</mosaic_0001>

<bundles_post_ra>
// kernel: tpu_custom_call.1
= control target key start
LH: loop header
LB: loop body
LE: loop exit
PB: predicated region body
PF: predicated region fallthrough
CT: control target
= control target key end

     0   :  { %s431_s12 = smov 0   ;;  %s433_s13 = smov 0   ;;  %s473_s0 = inlined_call_operand.vmem [shape: f32[16,32], index: 0, kind: input, shape index: {}]   ;;  %s474_s1 = inlined_call_operand.vmem [shape: s32[16,1], index: 1, kind: input, shape index: {}]   ;;  %s475_s2 = inlined_call_operand.vmem [shape: f32[16,1], index: 2, kind: input, shape index: {}]   ;;  %s476_s3 = inlined_call_operand.vmem [shape: f32[16,1], index: 3, kind: output, shape index: {}]  }
   0x1   :  { %s435_s14 = smov 0  }
   0x2 LB: > { %s25_s15 = sadd.s32 1, %s403_s13  ;;  %p351_p0 = scmp.ge.s32.totalorder %s407_s14, 1  ;;  %s407_s14 = sphi %s435_s14, %s13_s14   ;;  %s403_s13 = sphi %s433_s13, %s478_s13   ;;  %s399_s12 = sphi %s431_s12, %s477_s12  }
   0x3   : > { %p27_p1 = scmp.ge.s32.totalorder %s25_s15, 2  ;;  %p171_p2 = scmp.lt.s32.totalorder %s407_s14, 3 }
   0x5   : > { %s480_s15 = smov (%p27_p1, %s25_s15), 0  ;;  %p172_p3 = pnand %p351_p0, %p171_p2 }
   0x6   : > { %p204_p4 = scmp.lt.s32.totalorder (!%p172_p3), %s399_s12, 1  ;;  %vm227_vm0 = vcmask (!%p172_p3), 261120   ;;  %v409_v0 = vmov (!%p172_p3), 0   ;;  %v410_v1 = vmov (!%p172_p3), 0.0   ;;  %v230_v3 = vlaneseq (!%p172_p3) }
   0x7   : > { %175 = sbr.rel (%p172_p3) target bundleno = 307 (0x133), region = 32  ;;  %384 = vset.pattern.permute.xlu0 (!%p172_p3), %v409_v0  ;;  %228 = vst.msk [vmem:[#allocation2] sm:$0xff] (!%p172_p3), %vm227_vm0, %v410_v1  ;;  %vm257_vm3 = vcmask (!%p172_p3), 7168  }
   0x8   : > { %v231_v4 = vand.u32 (!%p172_p3), 127, %v230_v3 }
   0xe   : > { %s482_s12 = smov (!%p204_p4, %s399_s12), 1  ;;  %v241_v6 = vld [vmem:[#allocation2] sm:$0xff] }
   0xf   : > { %s352_s16 = sshll.u32 %s482_s12, 3 }
  0x10   : > { %s214_s19 = scalar_lea.vmem %s474_s1, %s352_s16  ;;  %s210_s22 = scalar_lea.vmem %s473_s0, %s352_s16 }
  0x11   : > { %v232_v2 = vld [vmem:[%s214_s19] sm:$0xff]  ;;  %s218_s25 = scalar_lea.vmem %s475_s2, %s352_s16  ;;  %s222_s28 = scalar_lea.vmem %s476_s3, %s352_s16 }
  0x12   : > { %237 = vperm.xlu0 %384, %v232_v2   ;;  %v229_v5 = vld [vmem:[%s210_s22] sm:$0xff] }
  0x13   : > { %v248_v12 = vld [vmem:[%s218_s25] sm:$0xff] }
  0x14   : > { %vm253_vm2 = vcmp.gt.f32.partialorder %v248_v12, 0.0 }
  0x91   : > { %v238_v7 = vpop.permute.xlu0 %237 }
  0x92   : > { %vm239_vm1 = vcmp.eq.s32.totalorder %v231_v4, %v238_v7 }
  0x93   : > { %v240_v8 = vsel %vm239_vm1, %v229_v5, 0.0 }
  0x94   : > { %v242_v9 = vadd.f32 %v241_v6, %v240_v8 }
  0x96   : > { %244 = vst.msk [vmem:[#allocation2] sm:$0xff] %vm227_vm0, %v242_v9 }
  0x9d   : > { %v249_v10 = vld [vmem:[#allocation2] sm:$0xff] }
  0x9e   : > { %v250_v11 = vsel %vm227_vm0, %v249_v10, 0.0 }
  0x9f   : > { %251 = vadd.xlane.f32.xlu0 %v250_v11 }
 0x12c   : > { %v252_v13 = vpop.xlane.xlu0 %251 }
 0x12d   : > { %v254_v14 = vsub.f32 0.0, %v252_v13 }
 0x12f   : > { %v255_v15 = vmul.f32 %v254_v14, %v248_v12 }
 0x131   : > { %v256_v16 = vsel %vm253_vm2, %v255_v15, 0.0 }
 0x132   : > { %258 = vst.msk [vmem:[%s222_s28] sm:$0xff] %vm257_vm3, %v256_v16 }
 0x133 PF: > { %s13_s14 = sadd.s32 1, %s407_s14   ;;  %s477_s12 = smov %s403_s13 }
 0x134   : > { %p10_p5 = scmp.ge.s32.totalorder %s13_s14, 4   ;;  %s478_s13 = smov %s480_s15 }
 0x136   :  { %12 = sbr.rel (!%p10_p5) target bundleno = 2 (0x2), region = 76 }

</bundles_post_ra>
